<compile_context>
chip_gen: v7x
topology: tpu7x:2x2x1
jax: 0.10.0
libtpu: 0.0.40
codegen_flags: <defaults>
</compile_context>

<pallas_src>
import jax
import jax.numpy as jnp
from jax.experimental import pallas as pl
from jax.experimental.pallas import tpu as pltpu

STATE_SIZE = 9
NUM_ACTIONS = 5
HIDDEN_SIZE = 64


def _round_up(n, m):
    return ((n + m - 1) // m) * m


def dqn_kernel(x_ref, w1t_ref, b1_ref, w2t_ref, b2_ref, o_ref):
    # Natural "batch-on-sublanes" layout; all wrapper-side data movement removed.
    #   x_ref  : [TB, STATE_SIZE]            (contiguous HBM block)
    #   w1t_ref: [STATE_SIZE, HIDDEN_SIZE]   (fc1.weight.T, VMEM-resident)
    #   b1_ref : [1, HIDDEN_SIZE]
    #   w2t_ref: [HIDDEN_SIZE, NUM_ACTIONS]  (fc2.weight.T, VMEM-resident)
    #   b2_ref : [1, NUM_ACTIONS]
    #   o_ref  : [TB, NUM_ACTIONS]
    h = jnp.dot(x_ref[...], w1t_ref[...], preferred_element_type=jnp.float32)
    h = jnp.maximum(h + b1_ref[...], 0.0)                      # bias + ReLU
    q = jnp.dot(h, w2t_ref[...], preferred_element_type=jnp.float32)
    o_ref[...] = (q + b2_ref[...]).astype(o_ref.dtype)
    # TODO(synk): for the DQN action-selection path, a fused argmax over the 5
    # action columns (emitting [TB, 1] int32) would cut output HBM bytes 5x.


def dqn_forward(x, w1, b1, w2, b2, *, tb=2048):
    """Forward pass of DQNNet.

    x : [B, STATE_SIZE]                              float32
    w1: [HIDDEN_SIZE, STATE_SIZE], b1: [HIDDEN_SIZE]   (torch fc1 layout)
    w2: [NUM_ACTIONS, HIDDEN_SIZE], b2: [NUM_ACTIONS]  (torch fc2 layout)
    returns [B, NUM_ACTIONS] float32 (same semantics as DQNNet.forward)
    """
    B = x.shape[0]

    # Batch tile: multiple of 128 (or the full batch if it is smaller), capped
    # so VMEM stays well inside every generation's budget.
    tb = _round_up(min(max(int(tb), 1), 8192), 128)
    TB = B if B <= tb else tb
    grid = (pl.cdiv(B, TB),)  # ragged last block handled by Pallas

    # One-time, tiny (<3 KB) parameter re-layout; no per-element batch traffic.
    w1t = w1.T                                # [STATE_SIZE, HIDDEN_SIZE]
    w2t = w2.T                                # [HIDDEN_SIZE, NUM_ACTIONS]
    b1r = b1.reshape(1, HIDDEN_SIZE)
    b2r = b2.reshape(1, NUM_ACTIONS)

    # VMEM estimate: x/out tiles are lane-padded to 128 lanes (TB*512 B each,
    # x2 buffers) plus the [TB, HIDDEN] fc1 activation temp + headroom.
    est_vmem = 4 * TB * 512 + TB * HIDDEN_SIZE * 4 + (2 << 20)
    vmem_limit = int(min(max(est_vmem, 8 << 20), 32 << 20))

    cost = pl.CostEstimate(
        flops=2 * B * (STATE_SIZE * HIDDEN_SIZE + HIDDEN_SIZE * NUM_ACTIONS),
        transcendentals=0,
        bytes_accessed=(B * (STATE_SIZE + NUM_ACTIONS)
                        + w1.size + b1.size + w2.size + b2.size) * 4,
    )

    out = pl.pallas_call(
        dqn_kernel,
        out_shape=jax.ShapeDtypeStruct((B, NUM_ACTIONS), jnp.float32),
        grid=grid,
        in_specs=[
            pl.BlockSpec((TB, STATE_SIZE), lambda i: (i, 0)),             # x tile
            pl.BlockSpec((STATE_SIZE, HIDDEN_SIZE), lambda i: (0, 0)),    # w1.T (resident)
            pl.BlockSpec((1, HIDDEN_SIZE), lambda i: (0, 0)),             # b1   (resident)
            pl.BlockSpec((HIDDEN_SIZE, NUM_ACTIONS), lambda i: (0, 0)),   # w2.T (resident)
            pl.BlockSpec((1, NUM_ACTIONS), lambda i: (0, 0)),             # b2   (resident)
        ],
        out_specs=pl.BlockSpec((TB, NUM_ACTIONS), lambda i: (i, 0)),
        compiler_params=pltpu.CompilerParams(
            # TODO(synk): on v7x, if the profile shows one idle TensorCore,
            # switch this axis to pltpu.CORE_PARALLEL (needs >=2 grid blocks).
            dimension_semantics=("parallel",),
            vmem_limit_bytes=vmem_limit,
        ),
        cost_estimate=cost,
    )(x, w1t, b1r, w2t, b2r)

    return out


def init_params(key, state_size=STATE_SIZE, hidden_size=HIDDEN_SIZE,
                num_actions=NUM_ACTIONS):
    # Deterministic init mimicking nn.Linear's uniform(-1/sqrt(fan_in), 1/sqrt(fan_in)).
    # Weights kept in torch's [out_features, in_features] layout, biases 1-D.
    k1, k2, k3, k4 = jax.random.split(key, 4)
    bound1 = 1.0 / jnp.sqrt(jnp.float32(state_size))
    bound2 = 1.0 / jnp.sqrt(jnp.float32(hidden_size))
    w1 = jax.random.uniform(k1, (hidden_size, state_size), jnp.float32, -bound1, bound1)
    b1 = jax.random.uniform(k2, (hidden_size,), jnp.float32, -bound1, bound1)
    w2 = jax.random.uniform(k3, (num_actions, hidden_size), jnp.float32, -bound2, bound2)
    b2 = jax.random.uniform(k4, (num_actions,), jnp.float32, -bound2, bound2)
    return w1, b1, w2, b2


def reference_forward(x, w1, b1, w2, b2):
    # Standard [B, features] formulation (matches torch fc1 -> relu -> fc2).
    h = jnp.maximum(x @ w1.T + b1, 0.0)
    return h @ w2.T + b2


if __name__ == "__main__":
    key = jax.random.PRNGKey(0)
    kx, kx2, kp = jax.random.split(key, 3)
    w1, b1, w2, b2 = init_params(kp)

    # Small online-inference style batch (single block covering the batch).
    batch = 2
    x = jax.random.normal(kx, (batch, STATE_SIZE), jnp.float32)
    out = jax.block_until_ready(dqn_forward(x, w1, b1, w2, b2))
    ref = reference_forward(x, w1, b1, w2, b2)
    assert out.shape == (batch, NUM_ACTIONS)
    assert jnp.allclose(out, ref, atol=1e-5, rtol=1e-5)

    # Larger batch with a non-multiple-of-tile size to exercise the
    # multi-step, double-buffered batch grid and the ragged last block
    # (tb=128 -> 3 grid steps, last block only partially valid/written).
    batch2 = 260
    x2 = jax.random.normal(kx2, (batch2, STATE_SIZE), jnp.float32)
    out2 = jax.block_until_ready(dqn_forward(x2, w1, b1, w2, b2, tb=128))
    ref2 = reference_forward(x2, w1, b1, w2, b2)
    assert out2.shape == (batch2, NUM_ACTIONS)
    assert jnp.allclose(out2, ref2, atol=1e-5, rtol=1e-5)

    print("KERNEL_OK")
</pallas_src>

<mosaic_0001>
module attributes {stable_mosaic.version = 11 : i64} {
  func.func @dqn_kernel(%arg0: i32, %arg1: memref<2x9xf32, #tpu.memory_space<vmem>>, %arg2: memref<9x64xf32, #tpu.memory_space<vmem>>, %arg3: memref<1x64xf32, #tpu.memory_space<vmem>>, %arg4: memref<64x5xf32, #tpu.memory_space<vmem>>, %arg5: memref<1x5xf32, #tpu.memory_space<vmem>>, %arg6: memref<2x5xf32, #tpu.memory_space<vmem>>) attributes {dimension_semantics = [#tpu.dimension_semantics<parallel>], iteration_bounds = array<i64: 1>, scalar_prefetch = 0 : i64, scratch_operands = 0 : i64, tpu.core_type = #tpu.core_type<tc>, window_params = [{transform_indices = @transform_0, window_bounds = array<i64: 2, 9>}, {pipeline_mode = #tpu.pipeline_mode<synchronous>, transform_indices = @transform_1, window_bounds = array<i64: 9, 64>}, {pipeline_mode = #tpu.pipeline_mode<synchronous>, transform_indices = @transform_2, window_bounds = array<i64: 1, 64>}, {pipeline_mode = #tpu.pipeline_mode<synchronous>, transform_indices = @transform_3, window_bounds = array<i64: 64, 5>}, {pipeline_mode = #tpu.pipeline_mode<synchronous>, transform_indices = @transform_4, window_bounds = array<i64: 1, 5>}, {transform_indices = @transform_5, window_bounds = array<i64: 2, 5>}]} {
    %c0 = arith.constant 0 : index
    %c0_0 = arith.constant 0 : index
    %0 = vector.load %arg1[%c0, %c0_0] : memref<2x9xf32, #tpu.memory_space<vmem>>, vector<2x9xf32>
    %c0_1 = arith.constant 0 : index
    %c0_2 = arith.constant 0 : index
    %1 = vector.load %arg2[%c0_1, %c0_2] : memref<9x64xf32, #tpu.memory_space<vmem>>, vector<9x64xf32>
    %cst = arith.constant dense<0.000000e+00> : vector<2x64xf32>
    %2 = tpu.matmul %0, %1, %cst {dimension_numbers = #tpu.dot_dimension_numbers<[1], [0], [0], [1], [0, 0, 1, 1], [], []>} : vector<2x9xf32>, vector<9x64xf32>, vector<2x64xf32> -> vector<2x64xf32>
    %c0_3 = arith.constant 0 : index
    %c0_4 = arith.constant 0 : index
    %3 = vector.load %arg3[%c0_3, %c0_4] : memref<1x64xf32, #tpu.memory_space<vmem>>, vector<1x64xf32>
    %4 = vector.broadcast %3 : vector<1x64xf32> to vector<2x64xf32>
    %5 = arith.addf %2, %4 : vector<2x64xf32>
    %cst_5 = arith.constant 0.000000e+00 : f32
    %6 = vector.broadcast %cst_5 : f32 to vector<2x64xf32>
    %7 = arith.maximumf %5, %6 : vector<2x64xf32>
    %c0_6 = arith.constant 0 : index
    %c0_7 = arith.constant 0 : index
    %8 = vector.load %arg4[%c0_6, %c0_7] : memref<64x5xf32, #tpu.memory_space<vmem>>, vector<64x5xf32>
    %cst_8 = arith.constant dense<0.000000e+00> : vector<2x5xf32>
    %9 = tpu.matmul %7, %8, %cst_8 {dimension_numbers = #tpu.dot_dimension_numbers<[1], [0], [0], [1], [0, 0, 1, 1], [], []>} : vector<2x64xf32>, vector<64x5xf32>, vector<2x5xf32> -> vector<2x5xf32>
    %c0_9 = arith.constant 0 : index
    %c0_10 = arith.constant 0 : index
    %10 = vector.load %arg5[%c0_9, %c0_10] : memref<1x5xf32, #tpu.memory_space<vmem>>, vector<1x5xf32>
    %11 = vector.broadcast %10 : vector<1x5xf32> to vector<2x5xf32>
    %12 = arith.addf %9, %11 : vector<2x5xf32>
    %c0_11 = arith.constant 0 : index
    %c0_12 = arith.constant 0 : index
    %13 = vector.load %arg6[%c0_11, %c0_12] : memref<2x5xf32, #tpu.memory_space<vmem>>, vector<2x5xf32>
    tpu.vector_store %arg6[%c0_11, %c0_12], %12 {strides = array<i32>} : memref<2x5xf32, #tpu.memory_space<vmem>>, vector<2x5xf32>,
    return
  }
  func.func @transform_0(%arg0: i32) -> (i32, i32) {
    %c0_i32 = arith.constant 0 : i32
    %c0_i32_0 = arith.constant 0 : i32
    return %arg0, %c0_i32 : i32, i32
  }
  func.func @transform_1(%arg0: i32) -> (i32, i32) {
    %c0_i32 = arith.constant 0 : i32
    %c0_i32_0 = arith.constant 0 : i32
    %c0_i32_1 = arith.constant 0 : i32
    return %c0_i32, %c0_i32_0 : i32, i32
  }
  func.func @transform_2(%arg0: i32) -> (i32, i32) {
    %c0_i32 = arith.constant 0 : i32
    %c0_i32_0 = arith.constant 0 : i32
    %c0_i32_1 = arith.constant 0 : i32
    return %c0_i32, %c0_i32_0 : i32, i32
  }
  func.func @transform_3(%arg0: i32) -> (i32, i32) {
    %c0_i32 = arith.constant 0 : i32
    %c0_i32_0 = arith.constant 0 : i32
    %c0_i32_1 = arith.constant 0 : i32
    return %c0_i32, %c0_i32_0 : i32, i32
  }
  func.func @transform_4(%arg0: i32) -> (i32, i32) {
    %c0_i32 = arith.constant 0 : i32
    %c0_i32_0 = arith.constant 0 : i32
    %c0_i32_1 = arith.constant 0 : i32
    return %c0_i32, %c0_i32_0 : i32, i32
  }
  func.func @transform_5(%arg0: i32) -> (i32, i32) {
    %c0_i32 = arith.constant 0 : i32
    %c0_i32_0 = arith.constant 0 : i32
    return %arg0, %c0_i32 : i32, i32
  }
}

</mosaic_0001>

<bundles_post_ra>
// kernel: tpu_custom_call.1
= control target key start
LH: loop header
LB: loop body
LE: loop exit
PB: predicated region body
PF: predicated region fallthrough
CT: control target
= control target key end

     0   :  { %vm35_vm0 = vcmask 1040384   ;;  %v303_v2 = vmov 0.0|0.0   ;;  %vm304_vm1 = vmmov 1   ;;  %vm305_vm3 = vmmov 0   ;;  %s389_s0 = inlined_call_operand.vmem [shape: f32[2,9], index: 0, kind: input, shape index: {}]   ;;  %s390_s1 = inlined_call_operand.vmem [shape: f32[9,64], index: 1, kind: input, shape index: {}]   ;;  %s391_s2 = inlined_call_operand.vmem [shape: f32[1,64], index: 2, kind: input, shape index: {}]   ;;  %s392_s3 = inlined_call_operand.vmem [shape: f32[64,5], index: 3, kind: input, shape index: {}]   ;;  %s393_s4 = inlined_call_operand.vmem [shape: f32[1,5], index: 4, kind: input, shape index: {}]   ;;  %s394_s5 = inlined_call_operand.hbm [shape: f32[2,5], index: 5, kind: output, shape index: {}]  }
   0x1   :  { %v22_v0 = vld [vmem:[%s390_s1] sm:$0xff]  ;;  %v23_v1 = vld [vmem:[%s390_s1 + $0x8] sm:$0x1]  ;;  %258 = vmatprep.subr.bf16.mxu0 %v303_v2  ;;  %vm260_vm2 = vmpackc.low %vm35_vm0, %vm304_vm1  ;;  %262 = vmatprep.subr.bf16.mxu1 %v303_v2  ;;  %v306_v5 = vmov 0.0   ;;  %vm31_vm4 = vcmask 72704  }
   0x2   :  { %v259_v3 = vpack.c.bf16 %v23_v1, %v22_v0  ;;  %v110_v4 = vld [vmem:[%s392_s3] sm:$0xff]  ;;  %236 = vmatprep.mubr.msk.f32.mxu0 %vm305_vm3, %v306_v5  ;;  %v111_v6 = vld [vmem:[%s392_s3 + $0x8] sm:$0xff]  ;;  %v112_v7 = vld [vmem:[%s392_s3 + $0x10] sm:$0xff]  ;;  %255 = vmatprep.mubr.msk.f32.mxu1 %vm305_vm3, %v306_v5 }
   0x3   :  { %v113_v8 = vld [vmem:[%s392_s3 + $0x18] sm:$0xff]  ;;  %v21_v9 = vld [vmem:[%s389_s0] sm:$0x3]  ;;  %v263_v10 = vpack.c.bf16 %v111_v6, %v110_v4 }
   0x4   :  { %261 = vmatpush3.bf16.msk.msra.mxu0 %vm260_vm2, %v259_v3 }
   0x5   :  { %10 = vsyncpa [#allocation3], 0  ;;  %264 = vmatpush3.bf16.msra.mxu1 %v263_v10  ;;  %v266_v11 = vpack.c.bf16 %v113_v8, %v112_v7  ;;  %v114_v12 = vld [vmem:[%s392_s3 + $0x20] sm:$0xff]  ;;  %v115_v13 = vld [vmem:[%s392_s3 + $0x28] sm:$0xff]  ;;  %vm125_vm5 = vcmask 523264   ;;  %s307_s17 = smov [#allocation2]  }
   0x6   :  { %265 = vmatprep.subr.bf16.mxu1 %v303_v2  ;;  %v269_v14 = vpack.c.bf16 %v115_v13, %v114_v12  ;;  %v116_v15 = vld [vmem:[%s392_s3 + $0x30] sm:$0xff]  ;;  %v117_v16 = vld [vmem:[%s392_s3 + $0x38] sm:$0xff]  ;;  %v215_v18 = vld [vmem:[%s391_s2] ss:$0 sm:$0xff]  ;;  %s207_s18 = sshll.u32 %s307_s17, 4  ;;  %vm199_vm6 = vcmask 33792   ;;  %s208_s18 = int_to_ptr.vmem [resolvable:$true] %s207_s18 }
   0x7   :  { %237 = vmatmul.mubr.msk.f32.vlgmr.msra.gmra.mrb[0].mxu0 %vm31_vm4, %v21_v9  ;;  %v272_v17 = vpack.c.bf16 %v117_v16, %v116_v15  ;;  %v218_v23 = vld [vmem:[%s393_s4] ss:$0 sm:$0xff]  ;;  %s279_s3 = scalar_lea.vmem %s208_s18, 32  ;;  %p284_p1 = scmp.lt.s32.totalorder %s208_s18, %s208_s18 }
   0x8   :  { %p280_p0 = scmp.ne.s32.totalorder %s208_s18, %s279_s3  ;;  %p285_p2 = scmp.lt.s32.totalorder %s279_s3, %s279_s3 }
   0x9   :  { %267 = vmatpush3.bf16.msra.mxu1 %v266_v11 }
   0xa   :  { %268 = vmatprep.subr.bf16.mxu1 %v303_v2  ;;  %p286_p3 = por %p285_p2, %p284_p1 }
   0xc   :  { %p287_p4 = pnand %p286_p3, %p280_p0 }
   0xd   :  { %270 = vmatpush3.bf16.msra.mxu1 %v269_v14 }
   0xe   :  { %271 = vmatprep.subr.bf16.mxu1 %v303_v2 }
  0x11   :  { %273 = vmatpush3.bf16.msra.mxu1 %v272_v17 }
  0xda   :  { %v105_v19 = vpop.f32.mrb[0].mxu0 }
  0xdb   :  { %v106_v20 = vadd.f32 %v215_v18, %v105_v19  ;;  %v238_v21 = vpop.f32.mrb[1].mxu0 }
  0xdd   :  { %v109_v22 = vmax.f32 %v106_v20, 0.0 }
  0xdf   :  { %256 = vmatmul.mubr.msk.f32.vlgmr.msra.gmra.mrb[0].mxu1 %vm125_vm5, %v109_v22 }
 0x1b2   :  { %v195_v24 = vpop.f32.mrb[0].mxu1 }
 0x1b3   :  { %v196_v25 = vadd.f32 %v218_v23, %v195_v24  ;;  %v257_v26 = vpop.f32.mrb[1].mxu1 }
 0x1b5   :  { %200 = vst.msk [vmem:[#allocation2] sm:$0x3] %vm199_vm6, %v196_v25 }
 0x1b6   :  { %290 = shalt.err (!%p287_p4)
}
 0x1b7   :  { %s291_s20 = scalar_lea.hbm %s394_s5, 32 }
 0x1b8   :  { %p292_p5 = scmp.ne.s32.totalorder %s394_s5, %s291_s20  ;;  %p295_p6 = scmp.lt.u32.totalorder %s291_s20, %s394_s5 }
 0x1ba   :  { %p297_p7 = pnand %p295_p6, %p292_p5 }
 0x1bc   :  { %300 = shalt.err (!%p297_p7)
}
 0x1bd   :  { %210 = dma.vmem_to_hbm [thread:$0]  %s208_s18, 32, %s394_s5, [#allocation3]  }
 0x1be   :  { %301 = dma.done.wait [#allocation3], 32  }
 0x1bf   :  { %302 = vsyncadd [#allocation3], 4294967264 }
 0x1c0   :  { %214 = vsyncpa [#allocation3], 1 }

</bundles_post_ra>
